<compile_context>
chip_gen: v5e
topology: v5e:2x2
jax: 0.10.0
libtpu: 0.0.40
codegen_flags: <defaults>
</compile_context>

<pallas_src>
import jax
import jax.numpy as jnp
from jax.experimental import pallas as pl
from jax.experimental.pallas import tpu as pltpu

INPUT_SIZE = 20
HIDDEN_SIZE = 64
OUTPUT_SIZE = 2


def _round_up(n, m):
    return ((n + m - 1) // m) * m


def _vmem_capacity_bytes():
    """Physical VMEM per TensorCore; conservative 64 MiB fallback (v7x)."""
    try:
        return int(pltpu.get_tpu_info().vmem_capacity_bytes)
    except Exception:
        return 64 * 1024 * 1024


def _tile_budget():
    """Generation-aware (max batch-tile rows, scoped VMEM limit in bytes).

    Per-row double-buffered VMEM cost (lane-padded to 128):
      x tile f32  (TB, 20) -> 512 B/row * 2 buffers
      out tile f32 (TB, 2) -> 512 B/row * 2 buffers   ~= 2 KiB/row total.
    """
    cap = _vmem_capacity_bytes()
    if cap >= 128 * 1024 * 1024:
        # v5e / v6e: 128 MiB physical VMEM -> ~64 MiB of tiles, ample headroom.
        return 32768, 100 * 1024 * 1024
    # v7x: 64 MiB physical per TC -> ~32 MiB of tiles, ~16 MiB slack.
    return 16384, 48 * 1024 * 1024


def mlp_kernel(x_ref, w1_ref, b1_ref, w2_ref, b2_ref, o_ref):
    # In-kernel bf16 cast of the f32 input tile (VPU filler; keeps the HBM
    # stream f32-read-once while feeding the MXU bf16 operands).
    x_bf = x_ref[...].astype(jnp.bfloat16)
    # fc1 on the MXU: bf16 operands, f32 accumulation.
    h = jnp.dot(x_bf, w1_ref[...], preferred_element_type=jnp.float32)
    # bias + ReLU in f32 on the VPU (no bf16 VPU on v5e).
    h = jnp.maximum(h + b1_ref[...], 0.0)
    # fc2 on the MXU: cast activations to bf16 to match the bf16 weight.
    out = jnp.dot(h.astype(w2_ref.dtype), w2_ref[...],
                  preferred_element_type=jnp.float32)
    o_ref[...] = (out + b2_ref[...]).astype(o_ref.dtype)


def simple_nn_forward(x, w1, b1, w2, b2):
    """x: (B, INPUT_SIZE) f32; w1: (INPUT_SIZE, HIDDEN) f32; b1: (1, HIDDEN) f32;
       w2: (HIDDEN, OUTPUT) f32; b2: (1, OUTPUT) f32. Returns (B, OUTPUT) f32."""
    B = x.shape[0]

    tb_max, vmem_limit = _tile_budget()
    # Batch tile: multiple of 8 (sublane constraint); ragged last block is
    # handled by the cdiv grid (no wrapper pad / slice passes over x).
    TB = min(tb_max, _round_up(B, 8))
    grid = (pl.cdiv(B, TB),)

    # Tiny one-off casts (~5.5 KB total); weights stay resident in VMEM as bf16.
    w1_bf = w1.astype(jnp.bfloat16)
    w2_bf = w2.astype(jnp.bfloat16)

    return pl.pallas_call(
        mlp_kernel,
        out_shape=jax.ShapeDtypeStruct((B, OUTPUT_SIZE), jnp.float32),
        grid=grid,
        in_specs=[
            # x: f32, tiled along batch, streamed / double-buffered.
            pl.BlockSpec((TB, INPUT_SIZE), lambda i: (i, 0)),
            # weights / biases: constant index map -> resident in VMEM.
            pl.BlockSpec((INPUT_SIZE, HIDDEN_SIZE), lambda i: (0, 0)),
            pl.BlockSpec((1, HIDDEN_SIZE), lambda i: (0, 0)),
            pl.BlockSpec((HIDDEN_SIZE, OUTPUT_SIZE), lambda i: (0, 0)),
            pl.BlockSpec((1, OUTPUT_SIZE), lambda i: (0, 0)),
        ],
        out_specs=pl.BlockSpec((TB, OUTPUT_SIZE), lambda i: (i, 0)),
        compiler_params=pltpu.CompilerParams(
            # "parallel" is the documented megacore/TC-sharding mechanism; if a
            # v7x trace shows one TC active, switch to pltpu.CORE_PARALLEL.
            dimension_semantics=("parallel",),
            vmem_limit_bytes=vmem_limit,
        ),
    )(x, w1_bf, b1, w2_bf, b2)


def init_params(key):
    """Deterministic init mimicking nn.Linear's U(-1/sqrt(fan_in), 1/sqrt(fan_in))."""
    k1, k2, k3, k4 = jax.random.split(key, 4)
    bound1 = 1.0 / (INPUT_SIZE ** 0.5)
    bound2 = 1.0 / (HIDDEN_SIZE ** 0.5)
    # stored pre-transposed: (in, out)
    w1 = jax.random.uniform(k1, (INPUT_SIZE, HIDDEN_SIZE), jnp.float32,
                            minval=-bound1, maxval=bound1)
    b1 = jax.random.uniform(k2, (1, HIDDEN_SIZE), jnp.float32,
                            minval=-bound1, maxval=bound1)
    w2 = jax.random.uniform(k3, (HIDDEN_SIZE, OUTPUT_SIZE), jnp.float32,
                            minval=-bound2, maxval=bound2)
    b2 = jax.random.uniform(k4, (1, OUTPUT_SIZE), jnp.float32,
                            minval=-bound2, maxval=bound2)
    return w1, b1, w2, b2


if __name__ == "__main__":
    key = jax.random.PRNGKey(0)
    kx, kp = jax.random.split(key)

    batch = 8
    x = jax.random.normal(kx, (batch, INPUT_SIZE), jnp.float32)
    w1, b1, w2, b2 = init_params(kp)

    out = simple_nn_forward(x, w1, b1, w2, b2)
    out = jax.block_until_ready(out)
    assert out.shape == (batch, OUTPUT_SIZE)

    # Reference mirroring the kernel's bf16-operand / f32-accumulate path.
    x_bf = x.astype(jnp.bfloat16).astype(jnp.float32)
    w1_bf = w1.astype(jnp.bfloat16).astype(jnp.float32)
    w2_bf = w2.astype(jnp.bfloat16).astype(jnp.float32)
    h_ref = jnp.maximum(x_bf @ w1_bf + b1, 0.0)
    ref = h_ref.astype(jnp.bfloat16).astype(jnp.float32) @ w2_bf + b2
    assert jnp.allclose(out, ref, atol=1e-4, rtol=1e-4)

    # Sanity vs. pure-f32 math (loose tolerance: bf16 operand rounding).
    ref_f32 = jnp.maximum(x @ w1 + b1, 0.0) @ w2 + b2
    assert jnp.allclose(out, ref_f32, atol=5e-2, rtol=5e-2)

    print("KERNEL_OK")
</pallas_src>

<mosaic_0001>
module attributes {stable_mosaic.version = 11 : i64} {
  func.func @mlp_kernel(%arg0: i32, %arg1: memref<8x20xf32, #tpu.memory_space<vmem>>, %arg2: memref<20x64xbf16, #tpu.memory_space<vmem>>, %arg3: memref<1x64xf32, #tpu.memory_space<vmem>>, %arg4: memref<64x2xbf16, #tpu.memory_space<vmem>>, %arg5: memref<1x2xf32, #tpu.memory_space<vmem>>, %arg6: memref<8x2xf32, #tpu.memory_space<vmem>>) attributes {dimension_semantics = [#tpu.dimension_semantics<parallel>], iteration_bounds = array<i64: 1>, scalar_prefetch = 0 : i64, scratch_operands = 0 : i64, tpu.core_type = #tpu.core_type<tc>, window_params = [{transform_indices = @transform_0, window_bounds = array<i64: 8, 20>}, {pipeline_mode = #tpu.pipeline_mode<synchronous>, transform_indices = @transform_1, window_bounds = array<i64: 20, 64>}, {pipeline_mode = #tpu.pipeline_mode<synchronous>, transform_indices = @transform_2, window_bounds = array<i64: 1, 64>}, {pipeline_mode = #tpu.pipeline_mode<synchronous>, transform_indices = @transform_3, window_bounds = array<i64: 64, 2>}, {pipeline_mode = #tpu.pipeline_mode<synchronous>, transform_indices = @transform_4, window_bounds = array<i64: 1, 2>}, {transform_indices = @transform_5, window_bounds = array<i64: 8, 2>}]} {
    %c0 = arith.constant 0 : index
    %c0_0 = arith.constant 0 : index
    %0 = vector.load %arg1[%c0, %c0_0] : memref<8x20xf32, #tpu.memory_space<vmem>>, vector<8x20xf32>
    %1 = arith.truncf %0 : vector<8x20xf32> to vector<8x20xbf16>
    %c0_1 = arith.constant 0 : index
    %c0_2 = arith.constant 0 : index
    %2 = vector.load %arg2[%c0_1, %c0_2] : memref<20x64xbf16, #tpu.memory_space<vmem>>, vector<20x64xbf16>
    %cst = arith.constant dense<0.000000e+00> : vector<8x64xf32>
    %3 = tpu.matmul %1, %2, %cst {dimension_numbers = #tpu.dot_dimension_numbers<[1], [0], [0], [1], [0, 0, 1, 1], [], []>} : vector<8x20xbf16>, vector<20x64xbf16>, vector<8x64xf32> -> vector<8x64xf32>
    %c0_3 = arith.constant 0 : index
    %c0_4 = arith.constant 0 : index
    %4 = vector.load %arg3[%c0_3, %c0_4] : memref<1x64xf32, #tpu.memory_space<vmem>>, vector<1x64xf32>
    %5 = vector.broadcast %4 : vector<1x64xf32> to vector<8x64xf32>
    %6 = arith.addf %3, %5 : vector<8x64xf32>
    %cst_5 = arith.constant 0.000000e+00 : f32
    %7 = vector.broadcast %cst_5 : f32 to vector<8x64xf32>
    %8 = arith.maximumf %6, %7 : vector<8x64xf32>
    %9 = arith.truncf %8 : vector<8x64xf32> to vector<8x64xbf16>
    %c0_6 = arith.constant 0 : index
    %c0_7 = arith.constant 0 : index
    %10 = vector.load %arg4[%c0_6, %c0_7] : memref<64x2xbf16, #tpu.memory_space<vmem>>, vector<64x2xbf16>
    %cst_8 = arith.constant dense<0.000000e+00> : vector<8x2xf32>
    %11 = tpu.matmul %9, %10, %cst_8 {dimension_numbers = #tpu.dot_dimension_numbers<[1], [0], [0], [1], [0, 0, 1, 1], [], []>} : vector<8x64xbf16>, vector<64x2xbf16>, vector<8x2xf32> -> vector<8x2xf32>
    %c0_9 = arith.constant 0 : index
    %c0_10 = arith.constant 0 : index
    %12 = vector.load %arg5[%c0_9, %c0_10] : memref<1x2xf32, #tpu.memory_space<vmem>>, vector<1x2xf32>
    %13 = vector.broadcast %12 : vector<1x2xf32> to vector<8x2xf32>
    %14 = arith.addf %11, %13 : vector<8x2xf32>
    %c0_11 = arith.constant 0 : index
    %c0_12 = arith.constant 0 : index
    %15 = vector.load %arg6[%c0_11, %c0_12] : memref<8x2xf32, #tpu.memory_space<vmem>>, vector<8x2xf32>
    tpu.vector_store %arg6[%c0_11, %c0_12], %14 {strides = array<i32>} : memref<8x2xf32, #tpu.memory_space<vmem>>, vector<8x2xf32>,
    return
  }
  func.func @transform_0(%arg0: i32) -> (i32, i32) {
    %c0_i32 = arith.constant 0 : i32
    %c0_i32_0 = arith.constant 0 : i32
    return %arg0, %c0_i32 : i32, i32
  }
  func.func @transform_1(%arg0: i32) -> (i32, i32) {
    %c0_i32 = arith.constant 0 : i32
    %c0_i32_0 = arith.constant 0 : i32
    %c0_i32_1 = arith.constant 0 : i32
    return %c0_i32, %c0_i32_0 : i32, i32
  }
  func.func @transform_2(%arg0: i32) -> (i32, i32) {
    %c0_i32 = arith.constant 0 : i32
    %c0_i32_0 = arith.constant 0 : i32
    %c0_i32_1 = arith.constant 0 : i32
    return %c0_i32, %c0_i32_0 : i32, i32
  }
  func.func @transform_3(%arg0: i32) -> (i32, i32) {
    %c0_i32 = arith.constant 0 : i32
    %c0_i32_0 = arith.constant 0 : i32
    %c0_i32_1 = arith.constant 0 : i32
    return %c0_i32, %c0_i32_0 : i32, i32
  }
  func.func @transform_4(%arg0: i32) -> (i32, i32) {
    %c0_i32 = arith.constant 0 : i32
    %c0_i32_0 = arith.constant 0 : i32
    %c0_i32_1 = arith.constant 0 : i32
    return %c0_i32, %c0_i32_0 : i32, i32
  }
  func.func @transform_5(%arg0: i32) -> (i32, i32) {
    %c0_i32 = arith.constant 0 : i32
    %c0_i32_0 = arith.constant 0 : i32
    return %arg0, %c0_i32 : i32, i32
  }
}

</mosaic_0001>

<bundles_post_ra>
// kernel: tpu_custom_call.1
= control target key start
LH: loop header
LB: loop body
LE: loop exit
PB: predicated region body
PF: predicated region fallthrough
CT: control target
= control target key end

     0   :  { %vm43_vm0 = vcmask 1041408   ;;  %vm39_vm1 = vcmask 162816   ;;  %vm98_vm2 = vcmask 523264   ;;  %vm115_vm3 = vcmask 15360   ;;  %s210_s1 = inlined_call_operand.vmem [shape: bf16[20,64], index: 1, kind: input, shape index: {}]   ;;  %s211_s3 = inlined_call_operand.vmem [shape: bf16[64,2], index: 3, kind: input, shape index: {}]   ;;  %s212_s2 = inlined_call_operand.vmem [shape: f32[1,64], index: 2, kind: input, shape index: {}]   ;;  %s213_s0 = inlined_call_operand.vmem [shape: f32[8,20], index: 0, kind: input, shape index: {}]   ;;  %s214_s4 = inlined_call_operand.vmem [shape: f32[1,2], index: 4, kind: input, shape index: {}]   ;;  %s215_s5 = inlined_call_operand.vmem [shape: f32[8,2], index: 5, kind: output, shape index: {}]  }
   0x1   :  { %v25_v0 = vld [vmem:[%s210_s1 + $0x8] sm:$0x3]  ;;  %v147_v2 = vld [vmem:[%s211_s3 + $0x18] sm:$0xff]  ;;  %v146_v4 = vld [vmem:[%s211_s3 + $0x10] sm:$0xff] }
   0x2   :  { %v35_v1 = vunpack.c.l.b16 %v25_v0  ;;  %106 = vmatpush.bf16.msra.mxu1 %v147_v2  ;;  %v143_v6 = vld [vmem:[%s210_s1] sm:$0xff]  ;;  %v145_v9 = vld [vmem:[%s211_s3 + $0x8] sm:$0xff] }
   0x3   :  { %v21_v7 = vld [vmem:[%s213_s0] sm:$0xff] }
   0x4   :  { %v37_v3 = vpack.c.b16 %v35_v1, %v35_v1  ;;  %v22_v8 = vpack.c.bf16 %v21_v7, %v21_v7  ;;  %v144_v10 = vld [vmem:[%s211_s3] sm:$0xff] }
   0x5   :  { %v148_v11 = vld [vmem:[%s212_s2] ss:$0 sm:$0xff] }
   0x6   :  { %v45_v5 = vsel %vm43_vm0, %v37_v3, 0  ;;  %107 = vmatpush.bf16.msra.mxu1 %v146_v4  ;;  %v149_v17 = vld [vmem:[%s214_s4] ss:$0 sm:$0xff] }
   0x7   :  { %53 = vmatpush.bf16.msra.mxu0 %v45_v5 }
   0xa   :  { %108 = vmatpush.bf16.msra.mxu1 %v145_v9 }
   0xb   :  { %54 = vmatpush.bf16.msra.mxu0 %v143_v6 }
   0xe   :  { %125 = vmatmul.msk.bf16.vlgmr.msra.gmra.mxu0 %vm39_vm1, %v22_v8  ;;  %109 = vmatpush.bf16.msra.mxu1 %v144_v10 }
  0x8b   :  { %v56_v12 = vpop.f32.mrf.mxu0 }
  0x8c   :  { %v57_v13 = vadd.f32 %v148_v11, %v56_v12 }
  0x8e   :  { %v60_v14 = vmax.f32 %v57_v13, 0.0 }
  0x90   :  { %v61_v15 = vpack.c.bf16 %v60_v14, %v60_v14 }
  0x92   :  { %142 = vmatmul.msk.bf16.vlgmr.msra.gmra.mxu1 %vm98_vm2, %v61_v15 }
  0x93   :  { %v58_v16 = vpop.f32.mrf.mxu0 }
 0x10f   :  { %v111_v18 = vpop.f32.mrf.mxu1 }
 0x110   :  { %v112_v19 = vadd.f32 %v149_v17, %v111_v18 }
 0x112   :  { %116 = vst.msk [vmem:[%s215_s5] sm:$0xff] %vm115_vm3, %v112_v19 }
 0x117   :  { %v113_v20 = vpop.f32.mrf.mxu1 }

</bundles_post_ra>
